<compile_context>
chip_gen: v7x
topology: tpu7x:2x2x1
jax: 0.10.0
libtpu: 0.0.40
codegen_flags: <defaults>
</compile_context>

<pallas_src>
from functools import partial

import numpy as np

import jax
import jax.numpy as jnp
from jax.experimental import pallas as pl
from jax.experimental.pallas import tpu as pltpu

_EPS = 1e-5


def _cyclic_shifts(a, s, hw):
    """(value at p+s, value at p-s) along the flattened spatial (lane) axis.

    Each is a single XLU lane-rotate.  The cyclic wrap across image rows /
    edges is overwritten by the jnp.where reflect fixes in the caller, so it
    never leaks into the result.
    """
    fwd = pltpu.roll(a, hw - s, axis=1)   # fwd[p] = a[(p + s) mod hw]
    bwd = pltpu.roll(a, s, axis=1)        # bwd[p] = a[(p - s) mod hw]
    return fwd, bwd


def _conv_in_relu(x, w_packed, zpad, masks, W):
    """3x3 reflect-pad conv -> InstanceNorm2d(affine=False) -> ReLU (lane-dense).

    x:        (C, HW)       f32, spatial flattened row-major on the lane axis.
    w_packed: (C, 9*cpad)   f32; column k*cpad + ci holds w[dy, dx, ci, co],
                            k = dy*3 + dx; columns [C, cpad) of each group are 0.
    zpad:     (cpad-C, HW)  f32 zeros (None if cpad == C).
    masks:    (left, right, top, bottom) bool masks, each (C, HW).

    The conv bias is intentionally absent: InstanceNorm2d(affine=False)
    subtracts the per-channel mean, so a per-channel bias cancels exactly.
    """
    C, HW = x.shape
    left, right, top, bottom = masks

    # Column (dx) taps with reflect at the left/right image edge.
    xp, xm = _cyclic_shifts(x, 1, HW)                    # col c+1 / c-1 (cyclic)
    col_taps = (
        jnp.where(left, xp, xm),      # dx=0: column c-1  (left edge  -> column 1)
        x,                            # dx=1: column c
        jnp.where(right, xm, xp),     # dx=2: column c+1  (right edge -> column W-2)
    )

    # Row (dy) taps with reflect at the top/bottom image edge.
    taps = [None] * 9
    for dx in range(3):
        below, above = _cyclic_shifts(col_taps[dx], W, HW)   # rows r+1 / r-1 (cyclic)
        taps[0 * 3 + dx] = jnp.where(top, below, above)      # dy=0: row r-1 (top edge -> row 1)
        taps[1 * 3 + dx] = col_taps[dx]                      # dy=1: row r
        taps[2 * 3 + dx] = jnp.where(bottom, above, below)   # dy=2: row r+1 (bottom edge -> row H-2)

    # im2col: stack the 9 taps into a (9*cpad, HW) patch matrix.  Each tap is
    # zero-padded to a sublane-8-aligned block (the matching weight columns are
    # zero), so the concat is vreg-aligned; then ONE MXU matmul does the whole
    # 3x3xCin contraction, keeping the VPU free for selects / IN / ReLU.
    parts = []
    for t in taps:
        parts.append(t)
        if zpad is not None:
            parts.append(zpad)
    patches = jnp.concatenate(parts, axis=0)                 # (9*cpad, HW)
    acc = jnp.dot(w_packed, patches,
                  preferred_element_type=jnp.float32,
                  precision=jax.lax.Precision.HIGHEST)       # (C, HW), f32-exact

    # InstanceNorm2d(affine=False, eps=1e-5): single-pass biased stats over the
    # lane (spatial) axis, then one fused scale/shift.
    inv_hw = 1.0 / HW
    mean = jnp.sum(acc, axis=1, keepdims=True) * inv_hw
    ex2 = jnp.sum(acc * acc, axis=1, keepdims=True) * inv_hw
    inv_std = jax.lax.rsqrt(ex2 - mean * mean + _EPS)
    y = acc * inv_std - mean * inv_std
    return jnp.maximum(y, 0.0)                               # ReLU


def _residual_block_kernel(masks_ref, x_ref, w1_ref, w2_ref, o_ref, *, W, cpad):
    # masks_ref: (4, HW) int32   rows: [col==0, col==W-1, row==0, row==H-1]
    # x_ref:     (1, C, HW)      one image, channel-major, spatial on the lane axis
    # w*_ref:    (C, 9*cpad)     packed conv weights
    # o_ref:     (1, C, HW)
    C = x_ref.shape[1]
    HW = x_ref.shape[2]

    # Hoisted edge masks: compared/broadcast once, reused by both ConvBlocks.
    m = masks_ref[...]

    def edge(i):
        return jnp.broadcast_to(m[i:i + 1, :], (C, HW)) != 0

    masks = (edge(0), edge(1), edge(2), edge(3))
    zpad = None if cpad == C else jnp.zeros((cpad - C, HW), jnp.float32)

    x = x_ref[0].astype(jnp.float32)
    w1 = w1_ref[...].astype(jnp.float32)
    w2 = w2_ref[...].astype(jnp.float32)

    h = _conv_in_relu(x, w1, zpad, masks, W)      # ConvBlock 1 (stays on-chip)
    y = _conv_in_relu(h, w2, zpad, masks, W)      # ConvBlock 2
    o_ref[0] = (x + y).astype(o_ref.dtype)        # skip connection


def _pack_weights(w, cpad):
    """HWIO (3, 3, Cin, Cout) -> (Cout, 9*cpad) packed im2col weights.

    Tap k = dy*3 + dx occupies columns [k*cpad, k*cpad + Cin); the remaining
    columns of each group are zero (they face the sublane-padding rows of the
    patch matrix).
    """
    kh, kw, cin, cout = w.shape
    wt = jnp.transpose(w, (3, 0, 1, 2)).reshape(cout, kh * kw, cin)
    if cpad != cin:
        wt = jnp.concatenate(
            [wt, jnp.zeros((cout, kh * kw, cpad - cin), wt.dtype)], axis=2)
    return wt.reshape(cout, kh * kw * cpad)


@jax.jit
def residual_block(x_nchw, w1, b1, w2, b2):
    """ResidualBlock.forward: x + ConvBlock2(ConvBlock1(x)). NCHW in / NCHW out.

    b1 / b2 are accepted for interface parity with nn.Conv2d but never DMA'd:
    a per-channel conv bias is a mathematical no-op under
    InstanceNorm2d(affine=False).
    """
    del b1, b2
    N, C, H, W = x_nchw.shape
    HW = H * W
    # Preconditions of the lane-dense / wrap-and-mask formulation.
    assert HW % 128 == 0, "H*W must be a multiple of 128 (lane axis)"
    assert H >= 2 and W >= 2, "reflect padding needs H, W >= 2"

    cpad = -(-C // 8) * 8                      # sublane-8-aligned im2col group stride

    # NCHW is already channel-major: flattening spatial dims is free and puts
    # H*W (a multiple of 128) on the lane axis -> lane-dense DMAs/compute/stores.
    x_flat = x_nchw.reshape(N, C, HW)
    wp1 = _pack_weights(w1, cpad)
    wp2 = _pack_weights(w2, cpad)

    # Constant image-edge masks: one tiny int32 input; no col/row index maps,
    # no per-use int compares inside the kernel.
    pos = np.arange(HW, dtype=np.int32)
    col, row = pos % W, pos // W
    masks = jnp.asarray(
        np.stack([col == 0, col == W - 1, row == 0, row == H - 1]).astype(np.int32))

    out = pl.pallas_call(
        partial(_residual_block_kernel, W=W, cpad=cpad),
        out_shape=jax.ShapeDtypeStruct((N, C, HW), x_nchw.dtype),
        # One image per grid step; with N >= 2 the "parallel" axis feeds both
        # v7x TensorCores.  Constant-index blocks (masks/w1/w2 -> (0,0) every
        # step) are fetched once by the pipeline (block index unchanged between
        # consecutive steps), not re-DMA'd per iteration.
        grid=(N,),
        in_specs=[
            pl.BlockSpec((4, HW), lambda n: (0, 0)),          # edge masks (constant)
            pl.BlockSpec((1, C, HW), lambda n: (n, 0, 0)),    # x
            pl.BlockSpec((C, 9 * cpad), lambda n: (0, 0)),    # packed w1 (constant)
            pl.BlockSpec((C, 9 * cpad), lambda n: (0, 0)),    # packed w2 (constant)
        ],
        out_specs=pl.BlockSpec((1, C, HW), lambda n: (n, 0, 0)),
        compiler_params=pltpu.CompilerParams(dimension_semantics=("parallel",)),
        # Per-step VMEM footprint is a few hundred KiB — far below every
        # generation's budget.  TODO(synk): for realistic generator sizes
        # (C~64-128, H,W>=128) add a spatial tile axis with 1-row/col reflect
        # halos and size the fused block for v7x's 64 MiB VMEM (raise
        # vmem_limit_bytes for larger tiles on v5e/v6e's 128 MiB).
    )(masks, x_flat, wp1, wp2)
    return out.reshape(N, C, H, W)


# ---------------- pure-JAX reference (for correctness check) ----------------
def _ref_conv_block(x, w, b):
    xpad = jnp.pad(x, ((0, 0), (1, 1), (1, 1), (0, 0)), mode="reflect")
    y = jax.lax.conv_general_dilated(
        xpad, w, window_strides=(1, 1), padding="VALID",
        dimension_numbers=("NHWC", "HWIO", "NHWC"),
        precision=jax.lax.Precision.HIGHEST)
    y = y + b
    mean = jnp.mean(y, axis=(1, 2), keepdims=True)
    var = jnp.mean((y - mean) ** 2, axis=(1, 2), keepdims=True)
    y = (y - mean) * jax.lax.rsqrt(var + _EPS)
    return jnp.maximum(y, 0.0)


def _ref_residual_block(x_nchw, w1, b1, w2, b2):
    x = jnp.transpose(x_nchw, (0, 2, 3, 1))
    h = _ref_conv_block(x, w1, b1)
    y = _ref_conv_block(h, w2, b2)
    return jnp.transpose(x + y, (0, 3, 1, 2))


if __name__ == "__main__":
    key = jax.random.PRNGKey(0)
    N, C, H, W = 2, 4, 16, 16    # in_chanel = 4

    k_x, k_w1, k_b1, k_w2, k_b2 = jax.random.split(key, 5)
    x = jax.random.normal(k_x, (N, C, H, W), dtype=jnp.float32)

    # Synthetic Conv2d parameters (weights in HWIO layout + biases).
    w1 = 0.1 * jax.random.normal(k_w1, (3, 3, C, C), dtype=jnp.float32)
    b1 = 0.01 * jax.random.normal(k_b1, (C,), dtype=jnp.float32)
    w2 = 0.1 * jax.random.normal(k_w2, (3, 3, C, C), dtype=jnp.float32)
    b2 = 0.01 * jax.random.normal(k_b2, (C,), dtype=jnp.float32)

    out = jax.block_until_ready(residual_block(x, w1, b1, w2, b2))

    # Reference keeps the bias -> also validates the bias-cancellation argument.
    ref = _ref_residual_block(x, w1, b1, w2, b2)
    assert out.shape == (N, C, H, W)
    assert jnp.allclose(out, ref, atol=2e-4, rtol=2e-4), "mismatch vs JAX reference"

    print("KERNEL_OK")
</pallas_src>

<mosaic_0001>
module attributes {stable_mosaic.version = 11 : i64} {
  func.func @_residual_block_kernel(%arg0: i32, %arg1: memref<4x256xi32, #tpu.memory_space<vmem>>, %arg2: memref<1x4x256xf32, #tpu.memory_space<vmem>>, %arg3: memref<4x72xf32, #tpu.memory_space<vmem>>, %arg4: memref<4x72xf32, #tpu.memory_space<vmem>>, %arg5: memref<1x4x256xf32, #tpu.memory_space<vmem>>) attributes {dimension_semantics = [#tpu.dimension_semantics<parallel>], iteration_bounds = array<i64: 2>, scalar_prefetch = 0 : i64, scratch_operands = 0 : i64, tpu.core_type = #tpu.core_type<tc>, window_params = [{pipeline_mode = #tpu.pipeline_mode<synchronous>, transform_indices = @transform_0, window_bounds = array<i64: 4, 256>}, {transform_indices = @transform_1, window_bounds = array<i64: 1, 4, 256>}, {pipeline_mode = #tpu.pipeline_mode<synchronous>, transform_indices = @transform_2, window_bounds = array<i64: 4, 72>}, {pipeline_mode = #tpu.pipeline_mode<synchronous>, transform_indices = @transform_3, window_bounds = array<i64: 4, 72>}, {transform_indices = @transform_4, window_bounds = array<i64: 1, 4, 256>}]} {
    %c0 = arith.constant 0 : index
    %c0_0 = arith.constant 0 : index
    %0 = vector.load %arg1[%c0, %c0_0] : memref<4x256xi32, #tpu.memory_space<vmem>>, vector<4x256xi32>
    %1 = vector.extract_strided_slice %0 {offsets = [0, 0], sizes = [1, 256], strides = [1, 1]} : vector<4x256xi32> to vector<1x256xi32>
    %2 = vector.shape_cast %1 : vector<1x256xi32> to vector<1x256xi32>
    %3 = vector.broadcast %2 : vector<1x256xi32> to vector<4x256xi32>
    %c0_i32 = arith.constant 0 : i32
    %4 = vector.broadcast %c0_i32 : i32 to vector<4x256xi32>
    %5 = arith.cmpi ne, %3, %4 : vector<4x256xi32>
    %6 = vector.extract_strided_slice %0 {offsets = [1, 0], sizes = [1, 256], strides = [1, 1]} : vector<4x256xi32> to vector<1x256xi32>
    %7 = vector.shape_cast %6 : vector<1x256xi32> to vector<1x256xi32>
    %8 = vector.broadcast %7 : vector<1x256xi32> to vector<4x256xi32>
    %c0_i32_1 = arith.constant 0 : i32
    %9 = vector.broadcast %c0_i32_1 : i32 to vector<4x256xi32>
    %10 = arith.cmpi ne, %8, %9 : vector<4x256xi32>
    %11 = vector.extract_strided_slice %0 {offsets = [2, 0], sizes = [1, 256], strides = [1, 1]} : vector<4x256xi32> to vector<1x256xi32>
    %12 = vector.shape_cast %11 : vector<1x256xi32> to vector<1x256xi32>
    %13 = vector.broadcast %12 : vector<1x256xi32> to vector<4x256xi32>
    %c0_i32_2 = arith.constant 0 : i32
    %14 = vector.broadcast %c0_i32_2 : i32 to vector<4x256xi32>
    %15 = arith.cmpi ne, %13, %14 : vector<4x256xi32>
    %16 = vector.extract_strided_slice %0 {offsets = [3, 0], sizes = [1, 256], strides = [1, 1]} : vector<4x256xi32> to vector<1x256xi32>
    %17 = vector.shape_cast %16 : vector<1x256xi32> to vector<1x256xi32>
    %18 = vector.broadcast %17 : vector<1x256xi32> to vector<4x256xi32>
    %c0_i32_3 = arith.constant 0 : i32
    %19 = vector.broadcast %c0_i32_3 : i32 to vector<4x256xi32>
    %20 = arith.cmpi ne, %18, %19 : vector<4x256xi32>
    %cst = arith.constant 0.000000e+00 : f32
    %21 = vector.broadcast %cst : f32 to vector<4x256xf32>
    %c0_4 = arith.constant 0 : index
    %c0_5 = arith.constant 0 : index
    %c0_6 = arith.constant 0 : index
    %22 = vector.load %arg2[%c0_4, %c0_5, %c0_6] : memref<1x4x256xf32, #tpu.memory_space<vmem>>, vector<1x4x256xf32>
    %23 = vector.shape_cast %22 : vector<1x4x256xf32> to vector<4x256xf32>
    %c0_7 = arith.constant 0 : index
    %c0_8 = arith.constant 0 : index
    %24 = vector.load %arg3[%c0_7, %c0_8] : memref<4x72xf32, #tpu.memory_space<vmem>>, vector<4x72xf32>
    %c0_9 = arith.constant 0 : index
    %c0_10 = arith.constant 0 : index
    %25 = vector.load %arg4[%c0_9, %c0_10] : memref<4x72xf32, #tpu.memory_space<vmem>>, vector<4x72xf32>
    %c255_i32 = arith.constant 255 : i32
    %26 = tpu.dynamic_rotate %23 by %c255_i32 dim 1 : vector<4x256xf32>, i32 -> vector<4x256xf32>
    %c1_i32 = arith.constant 1 : i32
    %27 = tpu.dynamic_rotate %23 by %c1_i32 dim 1 : vector<4x256xf32>, i32 -> vector<4x256xf32>
    %28 = arith.select %5, %26, %27 : vector<4x256xi1>, vector<4x256xf32>
    %29 = arith.select %10, %27, %26 : vector<4x256xi1>, vector<4x256xf32>
    %c240_i32 = arith.constant 240 : i32
    %30 = tpu.dynamic_rotate %28 by %c240_i32 dim 1 : vector<4x256xf32>, i32 -> vector<4x256xf32>
    %c16_i32 = arith.constant 16 : i32
    %31 = tpu.dynamic_rotate %28 by %c16_i32 dim 1 : vector<4x256xf32>, i32 -> vector<4x256xf32>
    %32 = arith.select %15, %30, %31 : vector<4x256xi1>, vector<4x256xf32>
    %33 = arith.select %20, %31, %30 : vector<4x256xi1>, vector<4x256xf32>
    %c240_i32_11 = arith.constant 240 : i32
    %34 = tpu.dynamic_rotate %23 by %c240_i32_11 dim 1 : vector<4x256xf32>, i32 -> vector<4x256xf32>
    %c16_i32_12 = arith.constant 16 : i32
    %35 = tpu.dynamic_rotate %23 by %c16_i32_12 dim 1 : vector<4x256xf32>, i32 -> vector<4x256xf32>
    %36 = arith.select %15, %34, %35 : vector<4x256xi1>, vector<4x256xf32>
    %37 = arith.select %20, %35, %34 : vector<4x256xi1>, vector<4x256xf32>
    %c240_i32_13 = arith.constant 240 : i32
    %38 = tpu.dynamic_rotate %29 by %c240_i32_13 dim 1 : vector<4x256xf32>, i32 -> vector<4x256xf32>
    %c16_i32_14 = arith.constant 16 : i32
    %39 = tpu.dynamic_rotate %29 by %c16_i32_14 dim 1 : vector<4x256xf32>, i32 -> vector<4x256xf32>
    %40 = arith.select %15, %38, %39 : vector<4x256xi1>, vector<4x256xf32>
    %41 = arith.select %20, %39, %38 : vector<4x256xi1>, vector<4x256xf32>
    %42 = tpu.concatenate %32, %21, %36, %21, %40, %21, %28, %21, %23, %21, %29, %21, %33, %21, %37, %21 in 0 : vector<4x256xf32>, vector<4x256xf32>, vector<4x256xf32>, vector<4x256xf32>, vector<4x256xf32>, vector<4x256xf32>, vector<4x256xf32>, vector<4x256xf32>, vector<4x256xf32>, vector<4x256xf32>, vector<4x256xf32>, vector<4x256xf32>, vector<4x256xf32>, vector<4x256xf32>, vector<4x256xf32>, vector<4x256xf32> -> vector<64x256xf32>
    %43 = tpu.concatenate %41, %21 in 0 : vector<4x256xf32>, vector<4x256xf32> -> vector<8x256xf32>
    %44 = tpu.concatenate %42, %43 in 0 : vector<64x256xf32>, vector<8x256xf32> -> vector<72x256xf32>
    %cst_15 = arith.constant dense<0.000000e+00> : vector<4x256xf32>
    %45 = tpu.matmul %24, %44, %cst_15 {dimension_numbers = #tpu.dot_dimension_numbers<[1], [0], [0], [1], [0, 0, 1, 1], [], []>, precision = #tpu.contract_precision<fp32>} : vector<4x72xf32>, vector<72x256xf32>, vector<4x256xf32> -> vector<4x256xf32>
    %cst_16 = arith.constant dense<0.000000e+00> : vector<4xf32>
    %46 = vector.multi_reduction <add>, %45, %cst_16 [1] : vector<4x256xf32> to vector<4xf32>
    %47 = vector.shape_cast %46 : vector<4xf32> to vector<4x1xf32>
    %cst_17 = arith.constant 3.906250e-03 : f32
    %48 = vector.broadcast %cst_17 : f32 to vector<4x1xf32>
    %49 = arith.mulf %47, %48 : vector<4x1xf32>
    %50 = arith.mulf %45, %45 : vector<4x256xf32>
    %cst_18 = arith.constant dense<0.000000e+00> : vector<4xf32>
    %51 = vector.multi_reduction <add>, %50, %cst_18 [1] : vector<4x256xf32> to vector<4xf32>
    %52 = vector.shape_cast %51 : vector<4xf32> to vector<4x1xf32>
    %cst_19 = arith.constant 3.906250e-03 : f32
    %53 = vector.broadcast %cst_19 : f32 to vector<4x1xf32>
    %54 = arith.mulf %52, %53 : vector<4x1xf32>
    %55 = arith.mulf %49, %49 : vector<4x1xf32>
    %56 = arith.subf %54, %55 : vector<4x1xf32>
    %cst_20 = arith.constant 9.99999974E-6 : f32
    %57 = vector.broadcast %cst_20 : f32 to vector<4x1xf32>
    %58 = arith.addf %56, %57 : vector<4x1xf32>
    %59 = math.rsqrt %58 : vector<4x1xf32>
    %60 = vector.broadcast %59 : vector<4x1xf32> to vector<4x256xf32>
    %61 = arith.mulf %45, %60 : vector<4x256xf32>
    %62 = arith.mulf %49, %59 : vector<4x1xf32>
    %63 = vector.broadcast %62 : vector<4x1xf32> to vector<4x256xf32>
    %64 = arith.subf %61, %63 : vector<4x256xf32>
    %cst_21 = arith.constant 0.000000e+00 : f32
    %65 = vector.broadcast %cst_21 : f32 to vector<4x256xf32>
    %66 = arith.maximumf %64, %65 : vector<4x256xf32>
    %c255_i32_22 = arith.constant 255 : i32
    %67 = tpu.dynamic_rotate %66 by %c255_i32_22 dim 1 : vector<4x256xf32>, i32 -> vector<4x256xf32>
    %c1_i32_23 = arith.constant 1 : i32
    %68 = tpu.dynamic_rotate %66 by %c1_i32_23 dim 1 : vector<4x256xf32>, i32 -> vector<4x256xf32>
    %69 = arith.select %5, %67, %68 : vector<4x256xi1>, vector<4x256xf32>
    %70 = arith.select %10, %68, %67 : vector<4x256xi1>, vector<4x256xf32>
    %c240_i32_24 = arith.constant 240 : i32
    %71 = tpu.dynamic_rotate %69 by %c240_i32_24 dim 1 : vector<4x256xf32>, i32 -> vector<4x256xf32>
    %c16_i32_25 = arith.constant 16 : i32
    %72 = tpu.dynamic_rotate %69 by %c16_i32_25 dim 1 : vector<4x256xf32>, i32 -> vector<4x256xf32>
    %73 = arith.select %15, %71, %72 : vector<4x256xi1>, vector<4x256xf32>
    %74 = arith.select %20, %72, %71 : vector<4x256xi1>, vector<4x256xf32>
    %c240_i32_26 = arith.constant 240 : i32
    %75 = tpu.dynamic_rotate %66 by %c240_i32_26 dim 1 : vector<4x256xf32>, i32 -> vector<4x256xf32>
    %c16_i32_27 = arith.constant 16 : i32
    %76 = tpu.dynamic_rotate %66 by %c16_i32_27 dim 1 : vector<4x256xf32>, i32 -> vector<4x256xf32>
    %77 = arith.select %15, %75, %76 : vector<4x256xi1>, vector<4x256xf32>
    %78 = arith.select %20, %76, %75 : vector<4x256xi1>, vector<4x256xf32>
    %c240_i32_28 = arith.constant 240 : i32
    %79 = tpu.dynamic_rotate %70 by %c240_i32_28 dim 1 : vector<4x256xf32>, i32 -> vector<4x256xf32>
    %c16_i32_29 = arith.constant 16 : i32
    %80 = tpu.dynamic_rotate %70 by %c16_i32_29 dim 1 : vector<4x256xf32>, i32 -> vector<4x256xf32>
    %81 = arith.select %15, %79, %80 : vector<4x256xi1>, vector<4x256xf32>
    %82 = arith.select %20, %80, %79 : vector<4x256xi1>, vector<4x256xf32>
    %83 = tpu.concatenate %73, %21, %77, %21, %81, %21, %69, %21, %66, %21, %70, %21, %74, %21, %78, %21 in 0 : vector<4x256xf32>, vector<4x256xf32>, vector<4x256xf32>, vector<4x256xf32>, vector<4x256xf32>, vector<4x256xf32>, vector<4x256xf32>, vector<4x256xf32>, vector<4x256xf32>, vector<4x256xf32>, vector<4x256xf32>, vector<4x256xf32>, vector<4x256xf32>, vector<4x256xf32>, vector<4x256xf32>, vector<4x256xf32> -> vector<64x256xf32>
    %84 = tpu.concatenate %82, %21 in 0 : vector<4x256xf32>, vector<4x256xf32> -> vector<8x256xf32>
    %85 = tpu.concatenate %83, %84 in 0 : vector<64x256xf32>, vector<8x256xf32> -> vector<72x256xf32>
    %cst_30 = arith.constant dense<0.000000e+00> : vector<4x256xf32>
    %86 = tpu.matmul %25, %85, %cst_30 {dimension_numbers = #tpu.dot_dimension_numbers<[1], [0], [0], [1], [0, 0, 1, 1], [], []>, precision = #tpu.contract_precision<fp32>} : vector<4x72xf32>, vector<72x256xf32>, vector<4x256xf32> -> vector<4x256xf32>
    %cst_31 = arith.constant dense<0.000000e+00> : vector<4xf32>
    %87 = vector.multi_reduction <add>, %86, %cst_31 [1] : vector<4x256xf32> to vector<4xf32>
    %88 = vector.shape_cast %87 : vector<4xf32> to vector<4x1xf32>
    %cst_32 = arith.constant 3.906250e-03 : f32
    %89 = vector.broadcast %cst_32 : f32 to vector<4x1xf32>
    %90 = arith.mulf %88, %89 : vector<4x1xf32>
    %91 = arith.mulf %86, %86 : vector<4x256xf32>
    %cst_33 = arith.constant dense<0.000000e+00> : vector<4xf32>
    %92 = vector.multi_reduction <add>, %91, %cst_33 [1] : vector<4x256xf32> to vector<4xf32>
    %93 = vector.shape_cast %92 : vector<4xf32> to vector<4x1xf32>
    %cst_34 = arith.constant 3.906250e-03 : f32
    %94 = vector.broadcast %cst_34 : f32 to vector<4x1xf32>
    %95 = arith.mulf %93, %94 : vector<4x1xf32>
    %96 = arith.mulf %90, %90 : vector<4x1xf32>
    %97 = arith.subf %95, %96 : vector<4x1xf32>
    %cst_35 = arith.constant 9.99999974E-6 : f32
    %98 = vector.broadcast %cst_35 : f32 to vector<4x1xf32>
    %99 = arith.addf %97, %98 : vector<4x1xf32>
    %100 = math.rsqrt %99 : vector<4x1xf32>
    %101 = vector.broadcast %100 : vector<4x1xf32> to vector<4x256xf32>
    %102 = arith.mulf %86, %101 : vector<4x256xf32>
    %103 = arith.mulf %90, %100 : vector<4x1xf32>
    %104 = vector.broadcast %103 : vector<4x1xf32> to vector<4x256xf32>
    %105 = arith.subf %102, %104 : vector<4x256xf32>
    %cst_36 = arith.constant 0.000000e+00 : f32
    %106 = vector.broadcast %cst_36 : f32 to vector<4x256xf32>
    %107 = arith.maximumf %105, %106 : vector<4x256xf32>
    %108 = arith.addf %23, %107 : vector<4x256xf32>
    %c0_37 = arith.constant 0 : index
    %c0_38 = arith.constant 0 : index
    %c0_39 = arith.constant 0 : index
    %109 = vector.load %arg5[%c0_37, %c0_38, %c0_39] : memref<1x4x256xf32, #tpu.memory_space<vmem>>, vector<1x4x256xf32>
    %110 = vector.shape_cast %109 : vector<1x4x256xf32> to vector<4x256xf32>
    %111 = vector.shape_cast %108 : vector<4x256xf32> to vector<1x4x256xf32>
    tpu.vector_store %arg5[%c0_37, %c0_38, %c0_39], %111 {strides = array<i32>} : memref<1x4x256xf32, #tpu.memory_space<vmem>>, vector<1x4x256xf32>,
    return
  }
  func.func @transform_0(%arg0: i32) -> (i32, i32) {
    %c0_i32 = arith.constant 0 : i32
    %c0_i32_0 = arith.constant 0 : i32
    %c0_i32_1 = arith.constant 0 : i32
    return %c0_i32, %c0_i32_0 : i32, i32
  }
  func.func @transform_1(%arg0: i32) -> (i32, i32, i32) {
    %c0_i32 = arith.constant 0 : i32
    %c0_i32_0 = arith.constant 0 : i32
    %c0_i32_1 = arith.constant 0 : i32
    return %arg0, %c0_i32, %c0_i32_0 : i32, i32, i32
  }
  func.func @transform_2(%arg0: i32) -> (i32, i32) {
    %c0_i32 = arith.constant 0 : i32
    %c0_i32_0 = arith.constant 0 : i32
    %c0_i32_1 = arith.constant 0 : i32
    return %c0_i32, %c0_i32_0 : i32, i32
  }
  func.func @transform_3(%arg0: i32) -> (i32, i32) {
    %c0_i32 = arith.constant 0 : i32
    %c0_i32_0 = arith.constant 0 : i32
    %c0_i32_1 = arith.constant 0 : i32
    return %c0_i32, %c0_i32_0 : i32, i32
  }
  func.func @transform_4(%arg0: i32) -> (i32, i32, i32) {
    %c0_i32 = arith.constant 0 : i32
    %c0_i32_0 = arith.constant 0 : i32
    %c0_i32_1 = arith.constant 0 : i32
    return %arg0, %c0_i32, %c0_i32_0 : i32, i32, i32
  }
}

</mosaic_0001>

<bundles_post_ra>
// kernel: residual_block.1
= control target key start
LH: loop header
LB: loop body
LE: loop exit
PB: predicated region body
PF: predicated region fallthrough
CT: control target
= control target key end

     0   :  { %s2194_s15 = smov 0   ;;  %s3000_s0 = inlined_call_operand.vmem [shape: s32[4,256], index: 0, kind: input, shape index: {}]   ;;  %s3001_s1 = inlined_call_operand.vmem [shape: f32[2,4,256], index: 1, kind: input, shape index: {}]   ;;  %s3002_s2 = inlined_call_operand.vmem [shape: f32[4,72], index: 2, kind: input, shape index: {}]   ;;  %s3003_s3 = inlined_call_operand.vmem [shape: f32[4,72], index: 3, kind: input, shape index: {}]   ;;  %s3004_s4 = inlined_call_operand.vmem [shape: f32[2,4,256], index: 4, kind: output, shape index: {}]  }
   0x1 LB: > { %s1912_s16 = sadd.s32 4294967295, %s2162_s15   ;;  %p1916_p0 = scmp.ge.s32.totalorder %s2162_s15, 1  ;;  %s2162_s15 = sphi %s2194_s15, %s14_s15  }
   0x2   : > { %p162_p1 = scmp.lt.s32.totalorder %s2162_s15, 3 }
   0x4   : > { %p163_p2 = pnand %p1916_p0, %p162_p1 }
   0x5   : > { %p188_p3 = scmp.lt.s32.totalorder (!%p163_p2), %s1912_s16, 1  ;;  %v199_v1 = vlaneseq (!%p163_p2)  ;;  %s2164_s21 = smov (!%p163_p2), 1   ;;  %v198_v6 = vld [vmem:[%s3000_s0] sm:$0xff] (!%p163_p2)  ;;  %vm347_vm0 = vcmask (!%p163_p2), 1043456   ;;  %v2168_v60 = vmov (!%p163_p2), 0.0   ;;  %vm366_vm11 = vcmask (!%p163_p2), 588800  }
   0x6   : > { %166 = sbr.rel (%p163_p2) target bundleno = 1506 (0x5e2), region = 36  ;;  %s2165_s22 = smov (!%p163_p2), 127   ;;  %452 = vmatprep.mubr.f32.mxu0 (!%p163_p2), %v2168_v60  ;;  %1235 = vmatprep.mubr.f32.mxu1 (!%p163_p2), %v2168_v60 }
   0x7   : > { %v200_v3 = vshrl.u32 (!%p163_p2), %v199_v1, 7  ;;  %s2166_s25 = smov (!%p163_p2), 112   ;;  %s2167_s26 = smov (!%p163_p2), 16   ;;  %v2252_v24 = vand.u32 (!%p163_p2), 127, %v199_v1 }
   0x9   : > { %v2223_v4 = vsub.s32 (!%p163_p2), 2, %v200_v3  ;;  %v241_v5 = vsub.s32 (!%p163_p2), 6, %v200_v3  ;;  %v2228_v7 = vsub.s32 (!%p163_p2), 3, %v200_v3  ;;  %v259_v8 = vsub.s32 (!%p163_p2), 7, %v200_v3 }
   0xa   : > { %v201_v17 = vsub.s32 (!%p163_p2), 0, %v200_v3  ;;  %v205_v18 = vsub.s32 (!%p163_p2), 4, %v200_v3  ;;  %v223_v19 = vsub.s32 (!%p163_p2), 5, %v200_v3  ;;  %v219_v23 = vsub.s32 (!%p163_p2), 1, %v200_v3 }
   0xb   : > { %v238_v9 = vrot.slane (!%p163_p2), %v198_v6, %v2223_v4  ;;  %v2231_v10 = vrot.slane (!%p163_p2), %v198_v6, %v241_v5  ;;  %v256_v11 = vrot.slane (!%p163_p2), %v198_v6, %v2228_v7  ;;  %v2237_v12 = vrot.slane (!%p163_p2), %v198_v6, %v259_v8 }
   0xc   : > { %v206_v20 = vrot.slane (!%p163_p2), %v198_v6, %v205_v18  ;;  %v202_v21 = vrot.slane (!%p163_p2), %v198_v6, %v201_v17  ;;  %v224_v22 = vrot.slane (!%p163_p2), %v198_v6, %v223_v19  ;;  %vm290_vm1 = vcmp.lt.s32.totalorder (!%p163_p2), %v2252_v24, 1 }
   0xd   : > { %s3039_s16 = smov (!%p188_p3, %s1912_s16), 1  ;;  %v2240_v13 = vrot.slane %v238_v9, %v2223_v4  ;;  %v250_v14 = vrot.slane %v2231_v10, %v2223_v4  ;;  %v2245_v15 = vrot.slane %v256_v11, %v2228_v7  ;;  %v268_v16 = vrot.slane %v2237_v12, %v2228_v7 }
   0xe   : > { %s1923_s17 = sshll.u32 %s3039_s16, 3  ;;  %v214_v25 = vrot.slane %v206_v20, %v201_v17  ;;  %v2254_v26 = vrot.slane %v202_v21, %v201_v17  ;;  %v232_v27 = vrot.slane %v224_v22, %v219_v23  ;;  %vm283_vm2 = vcmp.lt.s32.totalorder %v2252_v24, 127 }
   0xf   : > { %s2210_s20 = scalar_lea.vmem %s3001_s1, %s1923_s17  ;;  %v220_v34 = vrot.slane %v198_v6, %v219_v23  ;;  %vm301_vm7 = vcmp.lt.s32.totalorder %v2252_v24, 112  ;;  %vm308_vm8 = vcmp.lt.s32.totalorder %v2252_v24, 16  ;;  %vm251_vm9 = vcmp.ne.s32.totalorder %v2240_v13, 0  ;;  %s197_s7 = scalar_lea.vmem %s3004_s4, %s1923_s17 }
  0x10   : > { %v2213_v0 = vld [vmem:[%s2210_s20] sm:$0xff]  ;;  %vm2259_vm3 = vcmp.ne.s32.totalorder %v214_v25, 0  ;;  %vm215_vm4 = vcmp.ne.s32.totalorder %v2254_v26, 0  ;;  %vm2264_vm5 = vcmp.ne.s32.totalorder %v232_v27, 0  ;;  %vm2332_vm10 = vcmp.ne.s32.totalorder %v250_v14, 0 }
  0x11   : > { %286 = vrot.lane.b32.xlu1 %v2213_v0, %s2164_s21  ;;  %277 = vrot.lane.b32.xlu0 %v2213_v0, %s2165_s22  ;;  %v275_v2 = vcombine.high %v2213_v0, %v2213_v0  ;;  %v2293_v46 = vrot.slane %v220_v34, %v219_v23  ;;  %v2350_v18 = vsel %vm347_vm0, %v2213_v0, 0.0  ;;  %vm2375_vm12 = vcmp.ne.s32.totalorder %v268_v16, 0 }
  0x12   : > { %vm269_vm13 = vcmp.ne.s32.totalorder %v2245_v15, 0 }
  0x13   : > { %v357_v28 = vsel %vm347_vm0, %v275_v2, 0.0  ;;  %vm233_vm6 = vcmp.ne.s32.totalorder %v2293_v46, 0 }
  0x14   : > { %v386_v31 = vand.u32 4294901760, %v357_v28 }
  0x15   : > { %288 = vrot.lane.b32.xlu1 %v275_v2, %s2164_s21  ;;  %279 = vrot.lane.b32.xlu0 %v275_v2, %s2165_s22 }
  0x16   : > { %v2286_v44 = vsub.f32 %v357_v28, %v386_v31 }
  0x18   : > { %v514_v49 = vand.u32 4294901760, %v2286_v44 }
  0x19   : > { %317 = vrot.lane.b32.xlu1 %v275_v2, %s2166_s25  ;;  %315 = vrot.lane.b32.xlu0 %v2213_v0, %s2166_s25 }
  0x1a   : > { %v515_v53 = vsub.f32 %v2286_v44, %v514_v49 }
  0x1c   : > { %v516_v55 = vand.u32 4294901760, %v515_v53 }
  0x1d   : > { %323 = vrot.lane.b32.xlu1 %v275_v2, %s2167_s26  ;;  %321 = vrot.lane.b32.xlu0 %v2213_v0, %s2167_s26 }
  0x83   : > { %v287_v29 = vpop.permute.xlu1 %286  ;;  %v278_v30 = vpop.permute.xlu0 %277 }
  0x87   : > { %v289_v35 = vpop.permute.xlu1 %288  ;;  %v280_v36 = vpop.permute.xlu0 %279 }
  0x88   : > { %v291_v37 = vsel %vm290_vm1, %v287_v29, %v289_v35  ;;  %v292_v38 = vsel %vm290_vm1, %v289_v35, %v287_v29  ;;  %v284_v39 = vsel %vm283_vm2, %v278_v30, %v280_v36  ;;  %v285_v40 = vsel %vm283_vm2, %v280_v36, %v278_v30 }
  0x89   : > { %v2278_v41 = vsel %vm2259_vm3, %v285_v40, %v291_v37  ;;  %v2282_v42 = vsel %vm215_vm4, %v284_v39, %v292_v38  ;;  %v296_v43 = vsel %vm2264_vm5, %v291_v37, %v285_v40  ;;  %v2309_v52 = vsel %vm233_vm6, %v292_v38, %v284_v39  ;;  %v272_v39 = vld [vmem:[%s3002_s2] sm:$0xf] }
  0x8a   : > { %299 = vrot.lane.b32.xlu1 %v2278_v41, %s2166_s25  ;;  %297 = vrot.lane.b32.xlu0 %v2282_v42, %s2166_s25  ;;  %v359_v45 = vsel %vm347_vm0, %v296_v43, 0.0  ;;  %v388_v36 = vand.u32 4294901760, %v2350_v18  ;;  %v368_v7 = vsel %vm366_vm11, %v272_v39, 0 }
  0x8b   : > { %v390_v47 = vand.u32 4294901760, %v359_v45  ;;  %v318_v61 = vpop.permute.xlu1 %317  ;;  %v316_v62 = vpop.permute.xlu0 %315 }
  0x8c   : > { %v319_v3 = vsel %vm301_vm7, %v316_v62, %v318_v61  ;;  %v320_v5 = vsel %vm301_vm7, %v318_v61, %v316_v62 }
  0x8d   : > { %v2295_v48 = vsub.f32 %v359_v45, %v390_v47  ;;  %v2303_v50 = vpack.c.bf16 %v390_v47, %v386_v31  ;;  %v355_v47 = vsel %vm347_vm0, %v2278_v41, 0.0 }
  0x8e   : > { %306 = vrot.lane.b32.xlu1 %v2278_v41, %s2167_s26  ;;  %304 = vrot.lane.b32.xlu0 %v2282_v42, %s2167_s26 }
  0x8f   : > { %v526_v54 = vand.u32 4294901760, %v2295_v48  ;;  %v324_v63 = vpop.permute.xlu1 %323  ;;  %v322_v1 = vpop.permute.xlu0 %321 }
  0x90   : > { %v325_v6 = vsel %vm308_vm8, %v322_v1, %v324_v63  ;;  %v326_v8 = vsel %vm308_vm8, %v324_v63, %v322_v1 }
  0x91   : > { %v527_v56 = vsub.f32 %v2295_v48, %v526_v54  ;;  %v2322_v59 = vpack.c.bf16 %v526_v54, %v514_v49  ;;  %v327_v4 = vsel %vm251_vm9, %v319_v3, %v326_v8  ;;  %v328_v10 = vsel %vm2332_vm10, %v320_v5, %v325_v6 }
  0x92   : > { %333 = vrot.lane.b32.xlu1 %v296_v43, %s2166_s25  ;;  %331 = vrot.lane.b32.xlu0 %v2309_v52, %s2166_s25  ;;  %v350_v23 = vsel %vm347_vm0, %v327_v4, 0.0  ;;  %v351_v25 = vsel %vm347_vm0, %v328_v10, 0.0  ;;  %v2389_v54 = vsub.f32 %v2350_v18, %v388_v36 }
  0x93   : > { %v528_v57 = vand.u32 4294901760, %v527_v56  ;;  %v374_v37 = vand.u32 4294901760, %v351_v25  ;;  %v376_v38 = vand.u32 4294901760, %v350_v23  ;;  %v354_v56 = vsel %vm347_vm0, %v2282_v42, 0.0 }
  0x94   : > { %v382_v42 = vand.u32 4294901760, %v355_v47  ;;  %v384_v10 = vand.u32 4294901760, %v354_v56 }
  0x95   : > { %v2320_v58 = vpack.c.bf16 %v528_v57, %v516_v55  ;;  %v330_v57 = vsel %vm2375_vm12, %v325_v6, %v320_v5  ;;  %v358_v5 = vsel %vm347_vm0, %v2309_v52, 0.0 }
  0x96   : > { %339 = vrot.lane.b32.xlu1 %v296_v43, %s2167_s26  ;;  %337 = vrot.lane.b32.xlu0 %v2309_v52, %s2167_s26 }
  0xfc   : > { %v300_v9 = vpop.permute.xlu1 %299  ;;  %v298_v11 = vpop.permute.xlu0 %297 }
  0xfd   : > { %v302_v19 = vsel %vm301_vm7, %v298_v11, %v300_v9  ;;  %v303_v20 = vsel %vm301_vm7, %v300_v9, %v298_v11  ;;  %v2414_v11 = vand.u32 4294901760, %v368_v7 }
 0x100   : > { %v307_v14 = vpop.permute.xlu1 %306  ;;  %v305_v17 = vpop.permute.xlu0 %304 }
 0x101   : > { %v309_v21 = vsel %vm308_vm8, %v305_v17, %v307_v14  ;;  %v310_v22 = vsel %vm308_vm8, %v307_v14, %v305_v17  ;;  %v329_v14 = vsel %vm269_vm13, %v326_v8, %v319_v3  ;;  %v363_v17 = vsel %vm347_vm0, %v330_v57, 0.0 }
 0x102   : > { %v311_v0 = vsel %vm251_vm9, %v302_v19, %v310_v22  ;;  %v312_v27 = vsel %vm2332_vm10, %v303_v20, %v309_v21  ;;  %v314_v63 = vsel %vm2375_vm12, %v309_v21, %v303_v20  ;;  %v2423_v20 = vsub.f32 %v351_v25, %v374_v37 }
 0x103   : > { %v348_v28 = vsel %vm347_vm0, %v311_v0, 0.0  ;;  %v349_v29 = vsel %vm347_vm0, %v312_v27, 0.0  ;;  %v313_v21 = vsel %vm269_vm13, %v310_v22, %v302_v19  ;;  %v361_v27 = vsel %vm347_vm0, %v314_v63, 0.0 }
 0x104   : > { %v370_v30 = vand.u32 4294901760, %v349_v29  ;;  %v372_v31 = vand.u32 4294901760, %v348_v28  ;;  %v334_v34 = vpop.permute.xlu1 %333  ;;  %v332_v35 = vpop.permute.xlu0 %331  ;;  %v2437_v3 = vsub.f32 %v368_v7, %v2414_v11  ;;  %v2439_v8 = vsub.f32 %v355_v47, %v382_v42 }
 0x105   : > { %v335_v12 = vsel %vm301_vm7, %v332_v35, %v334_v34  ;;  %v336_v16 = vsel %vm301_vm7, %v334_v34, %v332_v35  ;;  %v392_v25 = vand.u32 4294901760, %v358_v5  ;;  %v3014_v19 = vand.u32 4294901760, %v2389_v54 }
 0x106   : > { %v2379_v43 = vpack.c.bf16 %v374_v37, %v370_v30  ;;  %v2381_v45 = vpack.c.bf16 %v376_v38, %v372_v31  ;;  %v2421_v0 = vsub.f32 %v349_v29, %v370_v30  ;;  %v2428_v34 = vsub.f32 %v348_v28, %v372_v31 }
 0x107   : > { %v2441_v29 = vsub.f32 %v350_v23, %v376_v38  ;;  %v2444_v22 = vsub.f32 %v354_v56, %v384_v10  ;;  %v360_v28 = vsel %vm347_vm0, %v313_v21, 0.0  ;;  %v394_v30 = vand.u32 4294901760, %v361_v27 }
 0x108   : > { %v340_v49 = vpop.permute.xlu1 %339  ;;  %v338_v53 = vpop.permute.xlu0 %337  ;;  %1926 = vmatprep.subr.bf16.mxu0 %v2379_v43  ;;  %v3011_v31 = vand.u32 4294901760, %v2421_v0  ;;  %v362_v37 = vsel %vm347_vm0, %v329_v14, 0.0  ;;  %v3007_v47 = vand.u32 4294901760, %v2428_v34  ;;  %v3008_v38 = vand.u32 4294901760, %v2423_v20 }
 0x109   : > { %v341_v41 = vsel %vm308_vm8, %v338_v53, %v340_v49  ;;  %v342_v55 = vsel %vm308_vm8, %v340_v49, %v338_v53  ;;  %1928 = vmatpush1.bf16.msra.mxu0 %v2381_v45  ;;  %v398_v49 = vand.u32 4294901760, %v363_v17  ;;  %v3005_v7 = vand.u32 4294901760, %v2437_v3 }
 0x10a   : > { %v343_v61 = vsel %vm251_vm9, %v335_v12, %v342_v55  ;;  %v344_v62 = vsel %vm2332_vm10, %v336_v16, %v341_v41  ;;  %v346_v23 = vsel %vm2375_vm12, %v341_v41, %v336_v16  ;;  %v3009_v57 = vand.u32 4294901760, %v2441_v29 }
 0x10b   : > { %v352_v1 = vsel %vm347_vm0, %v343_v61, 0.0  ;;  %v353_v9 = vsel %vm347_vm0, %v344_v62, 0.0  ;;  %v396_v61 = vand.u32 4294901760, %v360_v28  ;;  %v2463_v62 = vpack.c.bf16 %v392_v25, %v388_v36 }
 0x10c   : > { %v378_v6 = vand.u32 4294901760, %v353_v9  ;;  %v380_v4 = vand.u32 4294901760, %v352_v1  ;;  %v3010_v63 = vand.u32 4294901760, %v2439_v8  ;;  %v400_v16 = vand.u32 4294901760, %v362_v37 }
 0x10d   : > { %v2468_v41 = vpack.c.bf16 %v398_v49, %v394_v30  ;;  %v473_v36 = vsub.f32 %v2428_v34, %v3007_v47  ;;  %v485_v21 = vsub.f32 %v2441_v29, %v3009_v57  ;;  %v2508_v47 = vsub.f32 %v360_v28, %v396_v61 }
 0x10e   : > { %v2430_v52 = vsub.f32 %v353_v9, %v378_v6  ;;  %v2432_v35 = vpack.c.bf16 %v382_v42, %v378_v6  ;;  %v2434_v39 = vpack.c.bf16 %v384_v10, %v380_v4  ;;  %v2451_v53 = vsub.f32 %v352_v1, %v380_v4 }
 0x10f   : > { %v2466_v1 = vsub.f32 %v358_v5, %v392_v25  ;;  %v467_v9 = vsub.f32 %v2421_v0, %v3011_v31  ;;  %v345_v42 = vsel %vm269_vm13, %v342_v55, %v335_v12  ;;  %v365_v6 = vsel %vm347_vm0, %v346_v23, 0.0 }
 0x110   : > { %1930 = vmatprep.subr.bf16.mxu0 %v2432_v35  ;;  %v3006_v56 = vand.u32 4294901760, %v2430_v52  ;;  %v3012_v18 = vand.u32 4294901760, %v2451_v53  ;;  %v2481_v5 = vsub.f32 %v361_v27, %v394_v30  ;;  %v479_v4 = vsub.f32 %v2423_v20, %v3008_v38 }
 0x111   : > { %1932 = vmatpush1.bf16.msra.mxu0 %v2434_v39  ;;  %v456_v12 = vsub.f32 %v2437_v3, %v3005_v7  ;;  %v508_v10 = vand.u32 4294901760, %v2444_v22  ;;  %v2494_v14 = vpack.c.bf16 %v400_v16, %v396_v61  ;;  %v503_v27 = vsub.f32 %v2439_v8, %v3010_v63 }
 0x112   : > { %1934 = vmatprep.subr.bf16.mxu0 %v2303_v50  ;;  %v491_v55 = vsub.f32 %v2430_v52, %v3006_v56  ;;  %v2502_v25 = vsub.f32 %v363_v17, %v398_v49  ;;  %v364_v30 = vsel %vm347_vm0, %v345_v42, 0.0  ;;  %v2505_v23 = vand.u32 4294901760, %v365_v6 }
 0x113   : > { %v468_v7 = vand.u32 4294901760, %v467_v9  ;;  %v3013_v56 = vand.u32 4294901760, %v2466_v1  ;;  %v474_v38 = vand.u32 4294901760, %v473_v36  ;;  %v497_v57 = vsub.f32 %v2451_v53, %v3012_v18 }
 0x114   : > { %v480_v17 = vand.u32 4294901760, %v479_v4  ;;  %v457_v49 = vand.u32 4294901760, %v456_v12  ;;  %v492_v63 = vand.u32 4294901760, %v491_v55  ;;  %v538_v42 = vand.u32 4294901760, %v2481_v5 }
 0x115   : > { %1936 = vmatpush1.bf16.msra.mxu0 %v2463_v62  ;;  %v509_v9 = vsub.f32 %v2444_v22, %v508_v10  ;;  %v2519_v28 = vsub.f32 %v362_v37, %v400_v16  ;;  %v2521_v61 = vand.u32 4294901760, %v364_v30  ;;  %v486_v36 = vand.u32 4294901760, %v485_v21 }
 0x116   : > { %1938 = vmatprep.subr.bf16.mxu0 %v2468_v41  ;;  %v1941_v31 = vpack.c.bf16 %v480_v17, %v468_v7  ;;  %v504_v51 = vand.u32 4294901760, %v503_v27  ;;  %v521_v18 = vsub.f32 %v2389_v54, %v3014_v19  ;;  %v550_v4 = vand.u32 4294901760, %v2502_v25 }
 0x117   : > { %v533_v12 = vsub.f32 %v2466_v1, %v3013_v56  ;;  %v544_v55 = vand.u32 4294901760, %v2508_v47  ;;  %v1943_v37 = vpack.c.bf16 %v486_v36, %v474_v38  ;;  %v498_v16 = vand.u32 4294901760, %v497_v57 }
 0x118   : > { %v2533_v21 = vsub.f32 %v365_v6, %v2505_v23  ;;  %v1945_v7 = vpack.c.bf16 %v504_v51, %v492_v63  ;;  %v539_v27 = vsub.f32 %v2481_v5, %v538_v42  ;;  %v556_v17 = vand.u32 4294901760, %v2519_v28 }
 0x119   : > { %1940 = vmatpush1.bf16.msra.mxu0 %v2494_v14  ;;  %v510_v56 = vand.u32 4294901760, %v509_v9  ;;  %v522_v19 = vand.u32 4294901760, %v521_v18  ;;  %v551_v38 = vsub.f32 %v2502_v25, %v550_v4  ;;  %v534_v57 = vand.u32 4294901760, %v533_v12 }
 0x11a   : > { %403 = vmatprep.subr.mxu0 %v2505_v23  ;;  %v545_v63 = vsub.f32 %v2508_v47, %v544_v55  ;;  %v540_v6 = vand.u32 4294901760, %v539_v27  ;;  %v557_v18 = vsub.f32 %v2519_v28, %v556_v17 }
 0x11b   : > { %v1947_v51 = vpack.c.bf16 %v510_v56, %v498_v16  ;;  %v552_v9 = vand.u32 4294901760, %v551_v38  ;;  %v1951_v36 = vpack.c.bf16 %v534_v57, %v522_v19  ;;  %v1957_v19 = vpack.c.bf16 %v2423_v20, %v2421_v0 }
 0x11c   : > { %v558_v16 = vand.u32 4294901760, %v557_v18  ;;  %v1959_v38 = vpack.c.bf16 %v2441_v29, %v2428_v34  ;;  %v1961_v57 = vpack.c.bf16 %v2439_v8, %v2430_v52  ;;  %v1967_v18 = vpack.c.bf16 %v2466_v1, %v2389_v54 }
 0x11d   : > { %405 = vmatpush1.msra.mxu0 %v2521_v61  ;;  %v1953_v12 = vpack.c.bf16 %v552_v9, %v540_v6  ;;  %v3025_v6 = vpack.c.bf16 %v2295_v48, %v2286_v44  ;;  %v1969_v9 = vpack.c.bf16 %v2502_v25, %v2481_v5  ;;  %v3026_v44 = vand.u32 4294901760, %v2421_v0 }
 0x11e   : > { %1942 = vmatprep.subr.bf16.mxu0 %v1941_v31  ;;  %458 = vmatmul.mubr.f32.vlgmr.msra.gmra.mrb[0].mxu0 %v457_v49  ;;  %v2544_v31 = vsub.f32 %v364_v30, %v2521_v61  ;;  %v562_v49 = vand.u32 4294901760, %v2533_v21  ;;  %v546_v30 = vand.u32 4294901760, %v545_v63  ;;  %v1963_v63 = vpack.c.bf16 %v2444_v22, %v2451_v53 }
 0x11f   : > { %1944 = vmatpush1.bf16.msra.mxu0 %v1943_v37  ;;  %618 = vmatprep.mubr.f32.mxu0 %v2168_v60  ;;  %v3027_v48 = vand.u32 4294901760, %v2423_v20  ;;  %v3033_v0 = vand.u32 4294901760, %v2451_v53 }
 0x120   : > { %1946 = vmatprep.subr.bf16.mxu0 %v1945_v7  ;;  %v568_v56 = vand.u32 4294901760, %v2544_v31  ;;  %v563_v37 = vsub.f32 %v2533_v21, %v562_v49  ;;  %v1955_v7 = vpack.c.bf16 %v558_v16, %v546_v30  ;;  %v3028_v30 = vand.u32 4294901760, %v2428_v34 }
 0x121   : > { %v3030_v16 = vand.u32 4294901760, %v2437_v3  ;;  %v1995_v20 = vpack.c.bf16 %v508_v10, %v3033_v0  ;;  %v3034_v34 = vand.u32 4294901760, %v2389_v54 }
 0x122   : > { %v569_v27 = vsub.f32 %v2544_v31, %v568_v56 }
 0x123   : > { %1948 = vmatpush1.bf16.msra.mxu0 %v1947_v51  ;;  %v564_v51 = vand.u32 4294901760, %v563_v37 }
 0x124   : > { %1950 = vmatprep.subr.bf16.mxu0 %v2320_v58  ;;  %v570_v58 = vand.u32 4294901760, %v569_v27  ;;  %v3032_v27 = vand.u32 4294901760, %v2439_v8  ;;  %v2001_v8 = vpack.c.bf16 %v550_v4, %v538_v42 }
 0x127   : > { %1952 = vmatpush1.bf16.msra.mxu0 %v1951_v36  ;;  %v1971_v36 = vpack.c.bf16 %v2519_v28, %v2508_v47 }
 0x128   : > { %1954 = vmatprep.subr.bf16.mxu0 %v1953_v12  ;;  %v3029_v12 = vand.u32 4294901760, %v2441_v29  ;;  %v2003_v29 = vpack.c.bf16 %v556_v17, %v544_v55 }
 0x12a   : > { %v1991_v37 = vpack.c.bf16 %v3029_v12, %v3028_v30 }
 0x12b   : > { %1956 = vmatpush1.bf16.msra.mxu0 %v1955_v7  ;;  %v3031_v7 = vand.u32 4294901760, %v2430_v52 }
 0x12c   : > { %565 = vmatprep.subr.mxu0 %v564_v51 }
 0x12d   : > { %v1993_v51 = vpack.c.bf16 %v3032_v27, %v3031_v7 }
 0x12f   : > { %571 = vmatpush1.msra.mxu0 %v570_v58 }
 0x130   : > { %1958 = vmatprep.subr.bf16.mxu0 %v1957_v19  ;;  %620 = vmatmul.mubr.f32.vlgmr.msra.gmra.mrb[0].mxu0 %v2414_v11 }
 0x131   : > { %1960 = vmatpush1.bf16.msra.mxu0 %v1959_v38  ;;  %726 = vmatprep.mubr.f32.mxu0 %v2168_v60 }
 0x132   : > { %1962 = vmatprep.subr.bf16.mxu0 %v1961_v57 }
 0x135   : > { %1964 = vmatpush1.bf16.msra.mxu0 %v1963_v63 }
 0x136   : > { %1966 = vmatprep.subr.bf16.mxu0 %v3025_v6 }
 0x139   : > { %1968 = vmatpush1.bf16.msra.mxu0 %v1967_v18 }
 0x13a   : > { %1970 = vmatprep.subr.bf16.mxu0 %v1969_v9 }
 0x13d   : > { %1972 = vmatpush1.bf16.msra.mxu0 %v1971_v36 }
 0x13e   : > { %676 = vmatprep.subr.mxu0 %v2533_v21 }
 0x141   : > { %679 = vmatpush1.msra.mxu0 %v2544_v31  ;;  %v1989_v31 = vpack.c.bf16 %v3027_v48, %v3026_v44 }
 0x142   : > { %1974 = vmatprep.subr.bf16.mxu0 %v2379_v43  ;;  %729 = vmatmul.mubr.f32.vlgmr.msra.gmra.mrb[0].mxu0 %v2437_v3  ;;  %v3035_v3 = vand.u32 4294901760, %v2466_v1 }
 0x143   : > { %1976 = vmatpush1.bf16.msra.mxu0 %v2381_v45  ;;  %817 = vmatprep.mubr.f32.mxu0 %v2168_v60 }
 0x144   : > { %1978 = vmatprep.subr.bf16.mxu0 %v2432_v35  ;;  %v1999_v52 = vpack.c.bf16 %v3035_v3, %v3034_v34 }
 0x147   : > { %1980 = vmatpush1.bf16.msra.mxu0 %v2434_v39 }
 0x148   : > { %1982 = vmatprep.subr.bf16.mxu0 %v2303_v50 }
 0x14b   : > { %1984 = vmatpush1.bf16.msra.mxu0 %v2463_v62 }
 0x14c   : > { %1986 = vmatprep.subr.bf16.mxu0 %v2468_v41 }
 0x14f   : > { %1988 = vmatpush1.bf16.msra.mxu0 %v2494_v14 }
 0x150   : > { %768 = vmatprep.subr.mxu0 %v2505_v23 }
 0x153   : > { %770 = vmatpush1.msra.mxu0 %v2521_v61 }
 0x154   : > { %1990 = vmatprep.subr.bf16.mxu0 %v1989_v31  ;;  %821 = vmatmul.mubr.f32.vlgmr.msra.gmra.mrb[0].mxu0 %v3030_v16 }
 0x155   : > { %1992 = vmatpush1.bf16.msra.mxu0 %v1991_v37  ;;  %945 = vmatprep.mubr.f32.mxu0 %v2168_v60 }
 0x156   : > { %1994 = vmatprep.subr.bf16.mxu0 %v1993_v51 }
 0x159   : > { %1996 = vmatpush1.bf16.msra.mxu0 %v1995_v20 }
 0x15a   : > { %1998 = vmatprep.subr.bf16.mxu0 %v2322_v59 }
 0x15d   : > { %2000 = vmatpush1.bf16.msra.mxu0 %v1999_v52 }
 0x15e   : > { %2002 = vmatprep.subr.bf16.mxu0 %v2001_v8 }
 0x161   : > { %2004 = vmatpush1.bf16.msra.mxu0 %v2003_v29 }
 0x162   : > { %894 = vmatprep.subr.mxu0 %v562_v49 }
 0x165   : > { %898 = vmatpush1.msra.mxu0 %v568_v56 }
 0x166   : > { %2006 = vmatprep.subr.bf16.mxu0 %v2379_v43  ;;  %947 = vmatmul.mubr.f32.vlgmr.msra.gmra.mrb[0].mxu0 %v2414_v11 }
 0x167   : > { %2008 = vmatpush1.bf16.msra.mxu0 %v2381_v45  ;;  %1035 = vmatprep.mubr.f32.mxu0 %v2168_v60 }
 0x168   : > { %2010 = vmatprep.subr.bf16.mxu0 %v2432_v35 }
 0x16b   : > { %2012 = vmatpush1.bf16.msra.mxu0 %v2434_v39 }
 0x16c   : > { %2014 = vmatprep.subr.bf16.mxu0 %v2303_v50 }
 0x16f   : > { %2016 = vmatpush1.bf16.msra.mxu0 %v2463_v62 }
 0x170   : > { %2018 = vmatprep.subr.bf16.mxu0 %v2468_v41 }
 0x173   : > { %2020 = vmatpush1.bf16.msra.mxu0 %v2494_v14 }
 0x174   : > { %986 = vmatprep.subr.mxu0 %v2505_v23 }
 0x177   : > { %988 = vmatpush1.msra.mxu0 %v2521_v61 }
 0x178   : > { %1037 = vmatmul.mubr.f32.vlgmr.msra.gmra.mrb[0].mxu0 %v2414_v11 }
 0x24b   : > { %v1038_v59 = vpop.f32.mrb[0].mxu0 }
 0x24c   : > { %v1049_v43 = vmul.f32 %v1038_v59, %v1038_v59  ;;  %v1040_v45 = vpop.f32.mrb[1].mxu0  ;;  %v1043_v54 = vsel %vm347_vm0, %v1038_v59, 0.0 }
 0x24d   : > { %v1044_v35 = vsel %vm347_vm0, %v1040_v45, 0.0  ;;  %v1050_v50 = vmul.f32 %v1040_v45, %v1040_v45 }
 0x24e   : > { %v1045_v39 = vadd.f32 %v1044_v35, %v1043_v54  ;;  %v1051_v22 = vsel %vm347_vm0, %v1049_v43, 0.0 }
 0x24f   : > { %v1052_v47 = vsel %vm347_vm0, %v1050_v50, 0.0 }
 0x250   : > { %1046 = vadd.xlane.f32.xlu0 %v1045_v39  ;;  %v1053_v53 = vadd.f32 %v1052_v47, %v1051_v22 }
 0x252   : > { %1054 = vadd.xlane.f32.xlu1 %v1053_v53 }
 0x2dd   : > { %v1047_v62 = vpop.xlane.xlu0 %1046 }
 0x2de   : > { %v1048_v1 = vmul.f32 0.00390625, %v1047_v62 }
 0x2df   : > { %v1055_v41 = vpop.xlane.xlu1 %1054 }
 0x2e0   : > { %v1057_v11 = vmul.f32 %v1048_v1, %v1048_v1  ;;  %v1056_v5 = vmul.f32 0.00390625, %v1055_v41 }
 0x2e2   : > { %v1058_v10 = vsub.f32 %v1056_v5, %v1057_v11 }
 0x2e4   : > { %v1059_v14 = vadd.f32 1e-05, %v1058_v10 }
 0x2e6   : > { %2151 = vrsqrt.f32 %v1059_v14 }
 0x2f0   : > { %v2152_v25 = vpop.eup %2151 }
 0x2f1   : > { %v1062_v23 = vmul.f32 %v2152_v25, %v1040_v45  ;;  %v1063_v42 = vmul.f32 %v2152_v25, %v1048_v1  ;;  %v1061_v28 = vmul.f32 %v2152_v25, %v1038_v59 }
 0x2f3   : > { %v1065_v61 = vsub.f32 %v1062_v23, %v1063_v42  ;;  %v1064_v4 = vsub.f32 %v1061_v28, %v1063_v42 }
 0x2f5   : > { %v1067_v55 = vmax.f32 %v1065_v61, 0.0  ;;  %v1066_v21 = vmax.f32 %v1064_v4, 0.0 }
 0x2f7   : > { %1070 = vrot.lane.b32.xlu1 %v1067_v55, %s2165_s22  ;;  %1068 = vrot.lane.b32.xlu0 %v1066_v21, %s2165_s22  ;;  %v1140_v56 = vsel %vm347_vm0, %v1066_v21, 0.0  ;;  %v1141_v58 = vsel %vm347_vm0, %v1067_v55, 0.0 }
 0x2f8   : > { %v1171_v19 = vand.u32 4294901760, %v1140_v56  ;;  %v1169_v63 = vand.u32 4294901760, %v1141_v58 }
 0x2fa   : > { %v2679_v37 = vsub.f32 %v1140_v56, %v1171_v19  ;;  %v2681_v7 = vsub.f32 %v1141_v58, %v1169_v63 }
 0x2fb   : > { %1076 = vrot.lane.b32.xlu1 %v1067_v55, %s2164_s21  ;;  %1074 = vrot.lane.b32.xlu0 %v1066_v21, %s2164_s21 }
 0x2fc   : > { %v1303_v0 = vand.u32 4294901760, %v2679_v37  ;;  %v1297_v20 = vand.u32 4294901760, %v2681_v7 }
 0x2fe   : > { %v1304_v29 = vsub.f32 %v2679_v37, %v1303_v0  ;;  %v1298_v59 = vsub.f32 %v2681_v7, %v1297_v20 }
 0x2ff   : > { %1102 = vrot.lane.b32.xlu1 %v1067_v55, %s2166_s25  ;;  %1100 = vrot.lane.b32.xlu0 %v1066_v21, %s2166_s25 }
 0x300   : > { %v1305_v54 = vand.u32 4294901760, %v1304_v29  ;;  %v1299_v39 = vand.u32 4294901760, %v1298_v59 }
 0x303   : > { %1108 = vrot.lane.b32.xlu1 %v1067_v55, %s2167_s26  ;;  %1106 = vrot.lane.b32.xlu0 %v1066_v21, %s2167_s26 }
 0x369   : > { %v1071_v17 = vpop.permute.xlu1 %1070  ;;  %v1069_v49 = vpop.permute.xlu0 %1068 }
 0x36a   : > { %v1072_v6 = vsel %vm283_vm2, %v1069_v49, %v1071_v17  ;;  %v1073_v18 = vsel %vm283_vm2, %v1071_v17, %v1069_v49 }
 0x36d   : > { %v1077_v38 = vpop.permute.xlu1 %1076  ;;  %v1075_v57 = vpop.permute.xlu0 %1074 }
 0x36e   : > { %v1078_v9 = vsel %vm290_vm1, %v1075_v57, %v1077_v38  ;;  %v1079_v36 = vsel %vm290_vm1, %v1077_v38, %v1075_v57 }
 0x36f   : > { %v2663_v44 = vsel %vm215_vm4, %v1072_v6, %v1079_v36  ;;  %v2667_v48 = vsel %vm2259_vm3, %v1073_v18, %v1078_v9  ;;  %v1082_v31 = vsel %vm233_vm6, %v1079_v36, %v1072_v6  ;;  %v1083_v30 = vsel %vm2264_vm5, %v1078_v9, %v1073_v18 }
 0x370   : > { %1084 = vrot.lane.b32.xlu0 %v2663_v44, %s2166_s25  ;;  %1086 = vrot.lane.b32.xlu1 %v2667_v48, %s2166_s25  ;;  %v1142_v26 = vsel %vm347_vm0, %v1082_v31, 0.0  ;;  %v1143_v12 = vsel %vm347_vm0, %v1083_v30, 0.0 }
 0x371   : > { %v1175_v32 = vand.u32 4294901760, %v1142_v26  ;;  %v1173_v16 = vand.u32 4294901760, %v1143_v12  ;;  %v1103_v1 = vpop.permute.xlu1 %1102  ;;  %v1101_v41 = vpop.permute.xlu0 %1100 }
 0x372   : > { %v1104_v42 = vsel %vm301_vm7, %v1101_v41, %v1103_v1  ;;  %v1105_v28 = vsel %vm301_vm7, %v1103_v1, %v1101_v41 }
 0x373   : > { %v2683_v46 = vsub.f32 %v1142_v26, %v1175_v32  ;;  %v2685_v33 = vsub.f32 %v1143_v12, %v1173_v16  ;;  %v2691_v27 = vpack.c.bf16 %v1173_v16, %v1169_v63  ;;  %v2693_v51 = vpack.c.bf16 %v1175_v32, %v1171_v19  ;;  %v273_v32 = vld [vmem:[%s3003_s3] sm:$0xf] }
 0x374   : > { %1090 = vrot.lane.b32.xlu0 %v2663_v44, %s2167_s26  ;;  %1092 = vrot.lane.b32.xlu1 %v2667_v48, %s2167_s26  ;;  %v1151_v29 = vsel %vm366_vm11, %v273_v32, 0 }
 0x375   : > { %v1315_v34 = vand.u32 4294901760, %v2683_v46  ;;  %v2061_v3 = vpack.c.bf16 %v2685_v33, %v2681_v7  ;;  %v2063_v52 = vpack.c.bf16 %v2683_v46, %v2679_v37  ;;  %v1309_v8 = vand.u32 4294901760, %v2685_v33  ;;  %v1109_v11 = vpop.permute.xlu1 %1108  ;;  %v1107_v5 = vpop.permute.xlu0 %1106 }
 0x376   : > { %v1110_v10 = vsel %vm308_vm8, %v1107_v5, %v1109_v11  ;;  %v1111_v14 = vsel %vm308_vm8, %v1109_v11, %v1107_v5  ;;  %v2779_v11 = vand.u32 4294901760, %v1151_v29 }
 0x377   : > { %v1316_v43 = vsub.f32 %v2683_v46, %v1315_v34  ;;  %v1310_v45 = vsub.f32 %v2685_v33, %v1309_v8  ;;  %v2711_v50 = vpack.c.bf16 %v1309_v8, %v1297_v20  ;;  %v2715_v53 = vpack.c.bf16 %v1315_v34, %v1303_v0 }
 0x378   : > { %1116 = vrot.lane.b32.xlu0 %v1082_v31, %s2166_s25  ;;  %1118 = vrot.lane.b32.xlu1 %v1083_v30, %s2166_s25  ;;  %v1112_v61 = vsel %vm251_vm9, %v1104_v42, %v1111_v14  ;;  %v1113_v4 = vsel %vm2332_vm10, %v1105_v28, %v1110_v10  ;;  %v1139_v20 = vsel %vm347_vm0, %v2667_v48, 0.0  ;;  %v1138_v48 = vsel %vm347_vm0, %v2663_v44, 0.0 }
 0x379   : > { %v1317_v35 = vand.u32 4294901760, %v1316_v43  ;;  %v1311_v22 = vand.u32 4294901760, %v1310_v45  ;;  %v1134_v19 = vsel %vm347_vm0, %v1112_v61, 0.0  ;;  %v1135_v38 = vsel %vm347_vm0, %v1113_v4, 0.0 }
 0x37a   : > { %v1157_v26 = vand.u32 4294901760, %v1135_v38  ;;  %v1159_v12 = vand.u32 4294901760, %v1134_v19  ;;  %v1165_v44 = vand.u32 4294901760, %v1139_v20  ;;  %v1114_v13 = vsel %vm269_vm13, %v1111_v14, %v1104_v42 }
 0x37b   : > { %v2713_v47 = vpack.c.bf16 %v1317_v35, %v1305_v54  ;;  %v2717_v62 = vpack.c.bf16 %v1311_v22, %v1299_v39  ;;  %v1115_v35 = vsel %vm2375_vm12, %v1110_v10, %v1105_v28  ;;  %v2800_v14 = vsub.f32 %v1151_v29, %v2779_v11 }
 0x37c   : > { %1122 = vrot.lane.b32.xlu0 %v1082_v31, %s2167_s26  ;;  %1124 = vrot.lane.b32.xlu1 %v1083_v30, %s2167_s26  ;;  %v1147_v2 = vsel %vm347_vm0, %v1115_v35, 0.0  ;;  %v2786_v28 = vsub.f32 %v1135_v38, %v1157_v26  ;;  %v2802_v42 = vsub.f32 %v1139_v20, %v1165_v44  ;;  %v2804_v38 = vsub.f32 %v1134_v19, %v1159_v12 }
 0x37e   : > { %v3016_v20 = vand.u32 4294901760, %v2802_v42  ;;  %v3036_v46 = vand.u32 4294901760, %v2802_v42 }
 0x3e2   : > { %v1087_v25 = vpop.permute.xlu1 %1086  ;;  %v1085_v23 = vpop.permute.xlu0 %1084 }
 0x3e3   : > { %v1088_v17 = vsel %vm301_vm7, %v1085_v23, %v1087_v25  ;;  %v1089_v49 = vsel %vm301_vm7, %v1087_v25, %v1085_v23  ;;  %v1167_v25 = vand.u32 4294901760, %v1138_v48 }
 0x3e6   : > { %v1093_v55 = vpop.permute.xlu1 %1092  ;;  %v1091_v21 = vpop.permute.xlu0 %1090 }
 0x3e7   : > { %v1094_v56 = vsel %vm308_vm8, %v1091_v21, %v1093_v55  ;;  %v1095_v58 = vsel %vm308_vm8, %v1093_v55, %v1091_v21 }
 0x3e8   : > { %v1096_v57 = vsel %vm251_vm9, %v1088_v17, %v1095_v58  ;;  %v1097_v63 = vsel %vm2332_vm10, %v1089_v49, %v1094_v56  ;;  %v1099_v1 = vsel %vm2375_vm12, %v1094_v56, %v1089_v49  ;;  %v1098_v61 = vsel %vm269_vm13, %v1095_v58, %v1088_v17 }
 0x3e9   : > { %v1132_v6 = vsel %vm347_vm0, %v1096_v57, 0.0  ;;  %v1133_v18 = vsel %vm347_vm0, %v1097_v63, 0.0  ;;  %v1145_v4 = vsel %vm347_vm0, %v1099_v1, 0.0  ;;  %v1144_v57 = vsel %vm347_vm0, %v1098_v61, 0.0 }
 0x3ea   : > { %v1153_v9 = vand.u32 4294901760, %v1133_v18  ;;  %v1155_v36 = vand.u32 4294901760, %v1132_v6  ;;  %v1119_v31 = vpop.permute.xlu1 %1118  ;;  %v1117_v30 = vpop.permute.xlu0 %1116  ;;  %v1177_v17 = vand.u32 4294901760, %v1145_v4  ;;  %v1146_v63 = vsel %vm347_vm0, %v1114_v13, 0.0 }
 0x3eb   : > { %v1120_v59 = vsel %vm301_vm7, %v1117_v30, %v1119_v31  ;;  %v1121_v43 = vsel %vm301_vm7, %v1119_v31, %v1117_v30  ;;  %v1238_v31 = vand.u32 4294901760, %v2800_v14  ;;  %v1179_v32 = vand.u32 4294901760, %v1144_v57 }
 0x3ec   : > { %v2750_v16 = vpack.c.bf16 %v1157_v26, %v1153_v9  ;;  %v2752_v0 = vpack.c.bf16 %v1159_v12, %v1155_v36  ;;  %v2784_v23 = vsub.f32 %v1133_v18, %v1153_v9  ;;  %v2791_v55 = vsub.f32 %v1132_v6, %v1155_v36 }
 0x3ed   : > { %v1181_v6 = vand.u32 4294901760, %v1147_v2  ;;  %v1261_v36 = vand.u32 4294901760, %v2786_v28  ;;  %v2820_v26 = vsub.f32 %v1138_v48, %v1167_v25  ;;  %v1267_v12 = vand.u32 4294901760, %v2804_v38 }
 0x3ee   : > { %v1125_v34 = vpop.permute.xlu1 %1124  ;;  %v1123_v8 = vpop.permute.xlu0 %1122  ;;  %2022 = vmatprep.subr.bf16.mxu1 %v2750_v16  ;;  %v1249_v58 = vand.u32 4294901760, %v2784_v23  ;;  %v1255_v18 = vand.u32 4294901760, %v2791_v55  ;;  %v2837_v35 = vsub.f32 %v1145_v4, %v1177_v17  ;;  %v1239_v15 = vsub.f32 %v2800_v14, %v1238_v31 }
 0x3ef   : > { %v1126_v45 = vsel %vm308_vm8, %v1123_v8, %v1125_v34  ;;  %v1127_v54 = vsel %vm308_vm8, %v1125_v34, %v1123_v8  ;;  %2024 = vmatpush1.bf16.msra.mxu1 %v2752_v0  ;;  %v1183_v34 = vand.u32 4294901760, %v1146_v63  ;;  %v2824_v8 = vpack.c.bf16 %v1181_v6, %v1177_v17 }
 0x3f0   : > { %v1128_v39 = vsel %vm251_vm9, %v1120_v59, %v1127_v54  ;;  %v1129_v22 = vsel %vm2332_vm10, %v1121_v43, %v1126_v45  ;;  %v1131_v19 = vsel %vm2375_vm12, %v1126_v45, %v1121_v43  ;;  %v1250_v40 = vsub.f32 %v2784_v23, %v1249_v58 }
 0x3f1   : > { %v1136_v24 = vsel %vm347_vm0, %v1128_v39, 0.0  ;;  %v1137_v41 = vsel %vm347_vm0, %v1129_v22, 0.0  ;;  %v1130_v29 = vsel %vm269_vm13, %v1127_v54, %v1120_v59  ;;  %v1149_v43 = vsel %vm347_vm0, %v1131_v19, 0.0 }
 0x3f2   : > { %v1161_v5 = vand.u32 4294901760, %v1137_v41  ;;  %v1163_v10 = vand.u32 4294901760, %v1136_v24  ;;  %v1256_v48 = vsub.f32 %v2791_v55, %v1255_v18  ;;  %v1262_v39 = vsub.f32 %v2786_v28, %v1261_v36 }
 0x3f3   : > { %v1291_v54 = vand.u32 4294901760, %v2820_v26  ;;  %v2850_v22 = vpack.c.bf16 %v1183_v34, %v1179_v32  ;;  %v1268_v1 = vsub.f32 %v2804_v38, %v1267_v12  ;;  %v1240_v17 = vand.u32 4294901760, %v1239_v15 }
 0x3f4   : > { %v2793_v21 = vsub.f32 %v1137_v41, %v1161_v5  ;;  %v2795_v49 = vpack.c.bf16 %v1165_v44, %v1161_v5  ;;  %v2797_v56 = vpack.c.bf16 %v1167_v25, %v1163_v10  ;;  %v2811_v9 = vsub.f32 %v1136_v24, %v1163_v10 }
 0x3f5   : > { %v1286_v24 = vsub.f32 %v2802_v42, %v3016_v20  ;;  %v2858_v41 = vsub.f32 %v1147_v2, %v1181_v6  ;;  %v1148_v44 = vsel %vm347_vm0, %v1130_v29, 0.0  ;;  %v2861_v5 = vand.u32 4294901760, %v1149_v43 }
 0x3f6   : > { %2026 = vmatprep.subr.bf16.mxu1 %v2795_v49  ;;  %v1273_v30 = vand.u32 4294901760, %v2793_v21  ;;  %v3015_v45 = vand.u32 4294901760, %v2811_v9  ;;  %v1251_v10 = vand.u32 4294901760, %v1250_v40  ;;  %v2863_v25 = vsub.f32 %v1144_v57, %v1179_v32 }
 0x3f7   : > { %2028 = vmatpush1.bf16.msra.mxu1 %v2797_v56  ;;  %v1257_v13 = vand.u32 4294901760, %v1256_v48  ;;  %v1263_v4 = vand.u32 4294901760, %v1262_v39  ;;  %v1321_v6 = vand.u32 4294901760, %v2837_v35  ;;  %v1292_v19 = vsub.f32 %v2820_v26, %v1291_v54 }
 0x3f8   : > { %2030 = vmatprep.subr.bf16.mxu1 %v2691_v27  ;;  %v1274_v59 = vsub.f32 %v2793_v21, %v1273_v30  ;;  %v1280_v61 = vsub.f32 %v2811_v9, %v3015_v45  ;;  %v2874_v57 = vsub.f32 %v1146_v63, %v1183_v34  ;;  %v2876_v32 = vand.u32 4294901760, %v1148_v44 }
 0x3f9   : > { %v1269_v40 = vand.u32 4294901760, %v1268_v1  ;;  %v2037_v29 = vpack.c.bf16 %v1263_v4, %v1251_v10  ;;  %v1287_v48 = vand.u32 4294901760, %v1286_v24  ;;  %v1333_v45 = vand.u32 4294901760, %v2858_v41 }
 0x3fa   : > { %v1275_v2 = vand.u32 4294901760, %v1274_v59  ;;  %v1327_v20 = vand.u32 4294901760, %v2863_v25  ;;  %v1281_v15 = vand.u32 4294901760, %v1280_v61  ;;  %v2882_v59 = vsub.f32 %v1149_v43, %v2861_v5 }
 0x3fb   : > { %2032 = vmatpush1.bf16.msra.mxu1 %v2693_v51  ;;  %v2039_v39 = vpack.c.bf16 %v1269_v40, %v1257_v13  ;;  %v1322_v34 = vsub.f32 %v2837_v35, %v1321_v6  ;;  %v1339_v1 = vand.u32 4294901760, %v2874_v57  ;;  %v1293_v24 = vand.u32 4294901760, %v1292_v19 }
 0x3fc   : > { %2034 = vmatprep.subr.bf16.mxu1 %v2824_v8  ;;  %v2041_v63 = vpack.c.bf16 %v1287_v48, %v1275_v2  ;;  %v1334_v10 = vsub.f32 %v2858_v41, %v1333_v45  ;;  %v2893_v43 = vsub.f32 %v1148_v44, %v2876_v32  ;;  %v1328_v61 = vsub.f32 %v2863_v25, %v1327_v20 }
 0x3fd   : > { %v2043_v13 = vpack.c.bf16 %v1293_v24, %v1281_v15  ;;  %v1323_v4 = vand.u32 4294901760, %v1322_v34  ;;  %v1340_v2 = vsub.f32 %v2874_v57, %v1339_v1  ;;  %v2053_v24 = vpack.c.bf16 %v2786_v28, %v2784_v23 }
 0x3fe   : > { %v1335_v19 = vand.u32 4294901760, %v1334_v10  ;;  %v1329_v40 = vand.u32 4294901760, %v1328_v61  ;;  %v1351_v44 = vand.u32 4294901760, %v2893_v43  ;;  %v2055_v10 = vpack.c.bf16 %v2804_v38, %v2791_v55 }
 0x3ff   : > { %2036 = vmatpush1.bf16.msra.mxu1 %v2850_v22  ;;  %v2065_v61 = vpack.c.bf16 %v2858_v41, %v2837_v35  ;;  %v2085_v37 = vpack.c.bf16 %v1261_v36, %v1249_v58  ;;  %v2087_v7 = vpack.c.bf16 %v1267_v12, %v1255_v18  ;;  %v2089_v33 = vpack.c.bf16 %v3036_v46, %v1273_v30  ;;  %v2155_v35 = vld [vmem:[%s2210_s20] sm:$0xff] }
 0x400   : > { %1186 = vmatprep.subr.mxu1 %v2861_v5  ;;  %v2097_v23 = vpack.c.bf16 %v1333_v45, %v1321_v6  ;;  %v2099_v28 = vpack.c.bf16 %v1339_v1, %v1327_v20 }
 0x403   : > { %1188 = vmatpush1.msra.mxu1 %v2876_v32 }
 0x404   : > { %2038 = vmatprep.subr.bf16.mxu1 %v2037_v29  ;;  %1241 = vmatmul.mubr.f32.vlgmr.msra.gmra.mrb[0].mxu1 %v1240_v17  ;;  %v1345_v17 = vand.u32 4294901760, %v2882_v59  ;;  %v2049_v29 = vpack.c.bf16 %v1335_v19, %v1323_v4  ;;  %v2067_v4 = vpack.c.bf16 %v2874_v57, %v2863_v25 }
 0x405   : > { %2040 = vmatpush1.bf16.msra.mxu1 %v2039_v39  ;;  %1401 = vmatprep.mubr.f32.mxu1 %v2168_v60  ;;  %v1341_v39 = vand.u32 4294901760, %v1340_v2 }
 0x406   : > { %2042 = vmatprep.subr.bf16.mxu1 %v2041_v63  ;;  %v1346_v48 = vsub.f32 %v2882_v59, %v1345_v17  ;;  %v1352_v63 = vsub.f32 %v2893_v43, %v1351_v44 }
 0x407   : > { %v2051_v15 = vpack.c.bf16 %v1341_v39, %v1329_v40 }
 0x408   : > { %v1347_v34 = vand.u32 4294901760, %v1346_v48 }
 0x409   : > { %2044 = vmatpush1.bf16.msra.mxu1 %v2043_v13  ;;  %v2059_v13 = vpack.c.bf16 %v2820_v26, %v2811_v9 }
 0x40a   : > { %2046 = vmatprep.subr.bf16.mxu1 %v2717_v62  ;;  %v1353_v62 = vand.u32 4294901760, %v1352_v63 }
 0x40d   : > { %2048 = vmatpush1.bf16.msra.mxu1 %v2713_v47  ;;  %v2057_v47 = vpack.c.bf16 %v2802_v42, %v2793_v21 }
 0x40e   : > { %2050 = vmatprep.subr.bf16.mxu1 %v2049_v29 }
 0x411   : > { %2052 = vmatpush1.bf16.msra.mxu1 %v2051_v15 }
 0x412   : > { %1348 = vmatprep.subr.mxu1 %v1347_v34 }
 0x415   : > { %1354 = vmatpush1.msra.mxu1 %v1353_v62 }
 0x416   : > { %2054 = vmatprep.subr.bf16.mxu1 %v2053_v24  ;;  %1403 = vmatmul.mubr.f32.vlgmr.msra.gmra.mrb[0].mxu1 %v2779_v11 }
 0x417   : > { %2056 = vmatpush1.bf16.msra.mxu1 %v2055_v10  ;;  %1509 = vmatprep.mubr.f32.mxu1 %v2168_v60 }
 0x418   : > { %2058 = vmatprep.subr.bf16.mxu1 %v2057_v47 }
 0x41b   : > { %2060 = vmatpush1.bf16.msra.mxu1 %v2059_v13 }
 0x41c   : > { %2062 = vmatprep.subr.bf16.mxu1 %v2061_v3  ;;  %v3037_v3 = vand.u32 4294901760, %v2811_v9 }
 0x41f   : > { %2064 = vmatpush1.bf16.msra.mxu1 %v2063_v52  ;;  %v2091_v52 = vpack.c.bf16 %v1291_v54, %v3037_v3 }
 0x420   : > { %2066 = vmatprep.subr.bf16.mxu1 %v2065_v61 }
 0x423   : > { %2068 = vmatpush1.bf16.msra.mxu1 %v2067_v4 }
 0x424   : > { %1459 = vmatprep.subr.mxu1 %v2882_v59 }
 0x427   : > { %1462 = vmatpush1.msra.mxu1 %v2893_v43 }
 0x428   : > { %2070 = vmatprep.subr.bf16.mxu1 %v2750_v16  ;;  %1512 = vmatmul.mubr.f32.vlgmr.msra.gmra.mrb[0].mxu1 %v2800_v14 }
 0x429   : > { %2072 = vmatpush1.bf16.msra.mxu1 %v2752_v0  ;;  %1600 = vmatprep.mubr.f32.mxu1 %v2168_v60 }
 0x42a   : > { %2074 = vmatprep.subr.bf16.mxu1 %v2795_v49 }
 0x42d   : > { %2076 = vmatpush1.bf16.msra.mxu1 %v2797_v56 }
 0x42e   : > { %2078 = vmatprep.subr.bf16.mxu1 %v2691_v27 }
 0x431   : > { %2080 = vmatpush1.bf16.msra.mxu1 %v2693_v51 }
 0x432   : > { %2082 = vmatprep.subr.bf16.mxu1 %v2824_v8 }
 0x435   : > { %2084 = vmatpush1.bf16.msra.mxu1 %v2850_v22 }
 0x436   : > { %1551 = vmatprep.subr.mxu1 %v2861_v5 }
 0x439   : > { %1553 = vmatpush1.msra.mxu1 %v2876_v32 }
 0x43a   : > { %2086 = vmatprep.subr.bf16.mxu1 %v2085_v37  ;;  %1604 = vmatmul.mubr.f32.vlgmr.msra.gmra.mrb[0].mxu1 %v1238_v31 }
 0x43b   : > { %2088 = vmatpush1.bf16.msra.mxu1 %v2087_v7  ;;  %1728 = vmatprep.mubr.f32.mxu1 %v2168_v60 }
 0x43c   : > { %2090 = vmatprep.subr.bf16.mxu1 %v2089_v33 }
 0x43f   : > { %2092 = vmatpush1.bf16.msra.mxu1 %v2091_v52 }
 0x440   : > { %2094 = vmatprep.subr.bf16.mxu1 %v2711_v50 }
 0x443   : > { %2096 = vmatpush1.bf16.msra.mxu1 %v2715_v53 }
 0x444   : > { %2098 = vmatprep.subr.bf16.mxu1 %v2097_v23 }
 0x447   : > { %2100 = vmatpush1.bf16.msra.mxu1 %v2099_v28 }
 0x448   : > { %1677 = vmatprep.subr.mxu1 %v1345_v17 }
 0x44b   : > { %1681 = vmatpush1.msra.mxu1 %v1351_v44 }
 0x44c   : > { %2102 = vmatprep.subr.bf16.mxu1 %v2750_v16  ;;  %1730 = vmatmul.mubr.f32.vlgmr.msra.gmra.mrb[0].mxu1 %v2779_v11 }
 0x44d   : > { %2104 = vmatpush1.bf16.msra.mxu1 %v2752_v0  ;;  %1818 = vmatprep.mubr.f32.mxu1 %v2168_v60 }
 0x44e   : > { %2106 = vmatprep.subr.bf16.mxu1 %v2795_v49 }
 0x451   : > { %2108 = vmatpush1.bf16.msra.mxu1 %v2797_v56 }
 0x452   : > { %2110 = vmatprep.subr.bf16.mxu1 %v2691_v27 }
 0x455   : > { %2112 = vmatpush1.bf16.msra.mxu1 %v2693_v51 }
 0x456   : > { %2114 = vmatprep.subr.bf16.mxu1 %v2824_v8 }
 0x459   : > { %2116 = vmatpush1.bf16.msra.mxu1 %v2850_v22 }
 0x45a   : > { %1769 = vmatprep.subr.mxu1 %v2861_v5 }
 0x45d   : > { %1771 = vmatpush1.msra.mxu1 %v2876_v32 }
 0x45e   : > { %1820 = vmatmul.mubr.f32.vlgmr.msra.gmra.mrb[0].mxu1 %v2779_v11 }
 0x531   : > { %v1821_v50 = vpop.f32.mrb[0].mxu1 }
 0x532   : > { %v1832_v60 = vmul.f32 %v1821_v50, %v1821_v50  ;;  %v1823_v53 = vpop.f32.mrb[1].mxu1  ;;  %v1826_v16 = vsel %vm347_vm0, %v1821_v50, 0.0 }
 0x533   : > { %v1827_v0 = vsel %vm347_vm0, %v1823_v53, 0.0  ;;  %v1833_v27 = vmul.f32 %v1823_v53, %v1823_v53 }
 0x534   : > { %v1828_v55 = vadd.f32 %v1827_v0, %v1826_v16  ;;  %v1834_v51 = vsel %vm347_vm0, %v1832_v60, 0.0 }
 0x535   : > { %v1835_v21 = vsel %vm347_vm0, %v1833_v27, 0.0 }
 0x536   : > { %1829 = vadd.xlane.f32.xlu0 %v1828_v55  ;;  %v1836_v49 = vadd.f32 %v1835_v21, %v1834_v51 }
 0x538   : > { %1837 = vadd.xlane.f32.xlu1 %v1836_v49 }
 0x5c3   : > { %v1830_v56 = vpop.xlane.xlu0 %1829 }
 0x5c4   : > { %v1831_v14 = vmul.f32 0.00390625, %v1830_v56 }
 0x5c5   : > { %v1838_v11 = vpop.xlane.xlu1 %1837 }
 0x5c6   : > { %v1840_v42 = vmul.f32 %v1831_v14, %v1831_v14  ;;  %v1839_v38 = vmul.f32 0.00390625, %v1838_v11 }
 0x5c8   : > { %v1841_v58 = vsub.f32 %v1839_v38, %v1840_v42 }
 0x5ca   : > { %v1842_v18 = vadd.f32 1e-05, %v1841_v58 }
 0x5cc   : > { %2153 = vrsqrt.f32 %v1842_v18 }
 0x5d6   : > { %v2154_v9 = vpop.eup %2153 }
 0x5d7   : > { %v1844_v36 = vmul.f32 %v2154_v9, %v1821_v50  ;;  %v1845_v31 = vmul.f32 %v2154_v9, %v1823_v53  ;;  %v1846_v30 = vmul.f32 %v2154_v9, %v1831_v14 }
 0x5d9   : > { %v1847_v26 = vsub.f32 %v1844_v36, %v1846_v30  ;;  %v1848_v12 = vsub.f32 %v1845_v31, %v1846_v30 }
 0x5db   : > { %v1849_v20 = vmax.f32 %v1847_v26, 0.0  ;;  %v1850_v8 = vmax.f32 %v1848_v12, 0.0 }
 0x5dd   : > { %v1853_v45 = vcombine.low %v1849_v20, %v1850_v8 }
 0x5df   : > { %v1855_v54 = vadd.f32 %v2155_v35, %v1853_v45 }
 0x5e1   : > { %1856 = vst [vmem:[%s197_s7] sm:$0xff] %v1855_v54 }
 0x5e2 PF: > { %s14_s15 = sadd.s32 1, %s2162_s15  }
 0x5e3   : > { %p11_p4 = scmp.ge.s32.totalorder %s14_s15, 4  }
 0x5e5   :  { %13 = sbr.rel (!%p11_p4) target bundleno = 1 (0x1), region = 66 }

</bundles_post_ra>
